<compile_context>
chip_gen: v7x
topology: tpu7x:2x2x1
jax: 0.10.0
libtpu: 0.0.40
codegen_flags: <defaults>
</compile_context>

<pallas_src>
import functools

import jax
import jax.numpy as jnp
from jax.experimental import pallas as pl
from jax.experimental.pallas import tpu as pltpu

LANE = 128      # lane width / padded head-output width
HIDDEN = 128    # hidden width of the torch module


def _round_up(n, m):
    return ((n + m - 1) // m) * m


def dueling_head_kernel(x_ref, w1_ref, b1_ref, w2_ref, b2_ref,
                        wh_ref, bh_ref, wo_ref, bo_ref, o_ref):
    # common trunk: Linear -> ReLU -> Linear -> ReLU  (bf16 matmul, f32 acc)
    h = jnp.dot(x_ref[...], w1_ref[...], preferred_element_type=jnp.float32)
    h = jnp.maximum(h + b1_ref[...], 0.0).astype(jnp.bfloat16)
    h = jnp.dot(h, w2_ref[...], preferred_element_type=jnp.float32)
    h = jnp.maximum(h + b2_ref[...], 0.0).astype(jnp.bfloat16)

    # fused head hidden layer: [value_hidden | adv_hidden]  -> (TB, 256)
    hh = jnp.dot(h, wh_ref[...], preferred_element_type=jnp.float32)
    hh = jnp.maximum(hh + bh_ref[...], 0.0).astype(jnp.bfloat16)

    # fused block-diagonal head output layer (lane-dense (TB, 128) slab):
    #   lane 0      = value head output
    #   lanes 1..A  = advantage head outputs
    #   lanes A+1.. = zeros (padding)
    o_ref[...] = (jnp.dot(hh, wo_ref[...], preferred_element_type=jnp.float32)
                  + bo_ref[...])


@functools.partial(jax.jit, static_argnames=("out_dim",))
def dueling_forward(x, fused, *, out_dim):
    batch, in_dim = x.shape

    # Batch tile: big enough to amortize per-grid-step overhead, tiny vs VMEM
    # on every generation (v7x 64 MiB included): 2 buffers x TB x
    # (in_dim * 2B + 128 * 4B) plus ~140 KiB of resident bf16 weights.
    tb = min(512, _round_up(batch, 8))
    b_pad = _round_up(batch, tb)

    xb = x.astype(jnp.bfloat16)
    if b_pad != batch:
        xb = jnp.pad(xb, ((0, b_pad - batch), (0, 0)))

    def resident(arr):  # whole array, constant block index -> VMEM resident
        return pl.BlockSpec(arr.shape, lambda i: (0, 0))

    head = pl.pallas_call(
        dueling_head_kernel,
        out_shape=jax.ShapeDtypeStruct((b_pad, LANE), jnp.float32),
        grid=(b_pad // tb,),
        in_specs=[pl.BlockSpec((tb, in_dim), lambda i: (i, 0)),
                  resident(fused["w1"]), resident(fused["b1"]),
                  resident(fused["w2"]), resident(fused["b2"]),
                  resident(fused["wh"]), resident(fused["bh"]),
                  resident(fused["wo"]), resident(fused["bo"])],
        out_specs=pl.BlockSpec((tb, LANE), lambda i: (i, 0)),
        compiler_params=pltpu.CompilerParams(
            dimension_semantics=("parallel",)),
    )(xb, fused["w1"], fused["b1"], fused["w2"], fused["b2"],
      fused["wh"], fused["bh"], fused["wo"], fused["bo"])

    head = head[:batch]
    values = head[:, 0:1]
    adv = head[:, 1:1 + out_dim]
    # torch: output = values + (advantages - advantages.mean())
    # (global scalar mean over batch AND actions -> must be computed over all
    #  tiles, hence done here rather than per-tile inside the kernel)
    return values + (adv - jnp.mean(adv))


def init_params(key, input_dim, output_dim, hidden=HIDDEN):
    """PyTorch-style uniform(-1/sqrt(fan_in), 1/sqrt(fan_in)) init.

    Weights stored as (in, out) so the kernel computes x @ W directly.
    """
    def linear(key, fan_in, fan_out):
        kw, kb = jax.random.split(key)
        bound = 1.0 / jnp.sqrt(float(fan_in))
        w = jax.random.uniform(kw, (fan_in, fan_out), jnp.float32, -bound, bound)
        b = jax.random.uniform(kb, (1, fan_out), jnp.float32, -bound, bound)
        return w, b

    keys = jax.random.split(key, 6)
    w1, b1 = linear(keys[0], input_dim, hidden)
    w2, b2 = linear(keys[1], hidden, hidden)
    wq1, bq1 = linear(keys[2], hidden, hidden)
    wq2, bq2 = linear(keys[3], hidden, 1)
    wa1, ba1 = linear(keys[4], hidden, hidden)
    wa2, ba2 = linear(keys[5], hidden, output_dim)
    return dict(w1=w1, b1=b1, w2=w2, b2=b2,
                wq1=wq1, bq1=bq1, wq2=wq2, bq2=bq2,
                wa1=wa1, ba1=ba1, wa2=wa2, ba2=ba2)


def prepare_fused_params(p, output_dim):
    """Fuse the two head layers + cast matmul weights to bf16 (once, offline)."""
    hidden = p["w1"].shape[1]
    assert output_dim + 1 <= LANE, "fused output layer assumes output_dim+1 <= 128"
    # head hidden layer: [wq1 | wa1] -> (H, 2H)
    wh = jnp.concatenate([p["wq1"], p["wa1"]], axis=1)
    bh = jnp.concatenate([p["bq1"], p["ba1"]], axis=1)
    # head output layer: block-diagonal (2H, 128), lane 0 = value, 1..A = adv
    wo = jnp.zeros((2 * hidden, LANE), jnp.float32)
    wo = wo.at[:hidden, 0:1].set(p["wq2"])
    wo = wo.at[hidden:, 1:1 + output_dim].set(p["wa2"])
    bo = jnp.zeros((1, LANE), jnp.float32)
    bo = bo.at[0, 0:1].set(p["bq2"][0])
    bo = bo.at[0, 1:1 + output_dim].set(p["ba2"][0])
    bf = jnp.bfloat16
    return dict(w1=p["w1"].astype(bf), b1=p["b1"],
                w2=p["w2"].astype(bf), b2=p["b2"],
                wh=wh.astype(bf), bh=bh,
                wo=wo.astype(bf), bo=bo)


def dueling_forward_ref(x, p):
    """Pure-JAX fp32 reference (exact module semantics)."""
    h = jnp.maximum(x @ p["w1"] + p["b1"], 0.0)
    h = jnp.maximum(h @ p["w2"] + p["b2"], 0.0)
    v = jnp.maximum(h @ p["wq1"] + p["bq1"], 0.0)
    values = v @ p["wq2"] + p["bq2"]
    a = jnp.maximum(h @ p["wa1"] + p["ba1"], 0.0)
    adv = a @ p["wa2"] + p["ba2"]
    return values + (adv - jnp.mean(adv))


def _bf16_dot(a, b):
    return jnp.dot(a.astype(jnp.bfloat16), b.astype(jnp.bfloat16),
                   preferred_element_type=jnp.float32)


def dueling_forward_ref_bf16(x, p):
    """Reference emulating the kernel's bf16-matmul / fp32-accumulate numerics."""
    h = jnp.maximum(_bf16_dot(x, p["w1"]) + p["b1"], 0.0)
    h = jnp.maximum(_bf16_dot(h, p["w2"]) + p["b2"], 0.0)
    v = jnp.maximum(_bf16_dot(h, p["wq1"]) + p["bq1"], 0.0)
    values = _bf16_dot(v, p["wq2"]) + p["bq2"]
    a = jnp.maximum(_bf16_dot(h, p["wa1"]) + p["ba1"], 0.0)
    adv = _bf16_dot(a, p["wa2"]) + p["ba2"]
    return values + (adv - jnp.mean(adv))


if __name__ == "__main__":
    key = jax.random.PRNGKey(0)
    k_params, k_x = jax.random.split(key)

    batch, input_dim, output_dim = 8, 32, 8
    params = init_params(k_params, input_dim, output_dim)
    fused = prepare_fused_params(params, output_dim)
    x = jax.random.normal(k_x, (batch, input_dim), jnp.float32)

    out = dueling_forward(x, fused, out_dim=output_dim)
    out = jax.block_until_ready(out)
    assert out.shape == (batch, output_dim)

    # tight check vs. reference that matches the kernel's bf16 numerics
    ref_bf = dueling_forward_ref_bf16(x, params)
    assert jnp.allclose(out, ref_bf, atol=1e-3, rtol=1e-3), "mismatch vs bf16 reference"

    # loose check vs. full-precision module semantics (bf16 matmul error budget)
    ref32 = dueling_forward_ref(x, params)
    assert jnp.allclose(out, ref32, atol=5e-2, rtol=5e-2), "mismatch vs fp32 reference"

    print("KERNEL_OK")
</pallas_src>

<mosaic_0001>
module attributes {stable_mosaic.version = 11 : i64} {
  func.func @dueling_head_kernel(%arg0: i32, %arg1: memref<8x32xbf16, #tpu.memory_space<vmem>>, %arg2: memref<32x128xbf16, #tpu.memory_space<vmem>>, %arg3: memref<1x128xf32, #tpu.memory_space<vmem>>, %arg4: memref<128x128xbf16, #tpu.memory_space<vmem>>, %arg5: memref<1x128xf32, #tpu.memory_space<vmem>>, %arg6: memref<128x256xbf16, #tpu.memory_space<vmem>>, %arg7: memref<1x256xf32, #tpu.memory_space<vmem>>, %arg8: memref<256x128xbf16, #tpu.memory_space<vmem>>, %arg9: memref<1x128xf32, #tpu.memory_space<vmem>>, %arg10: memref<8x128xf32, #tpu.memory_space<vmem>>) attributes {dimension_semantics = [#tpu.dimension_semantics<parallel>], iteration_bounds = array<i64: 1>, scalar_prefetch = 0 : i64, scratch_operands = 0 : i64, tpu.core_type = #tpu.core_type<tc>, window_params = [{transform_indices = @transform_0, window_bounds = array<i64: 8, 32>}, {pipeline_mode = #tpu.pipeline_mode<synchronous>, transform_indices = @transform_1, window_bounds = array<i64: 32, 128>}, {pipeline_mode = #tpu.pipeline_mode<synchronous>, transform_indices = @transform_2, window_bounds = array<i64: 1, 128>}, {pipeline_mode = #tpu.pipeline_mode<synchronous>, transform_indices = @transform_3, window_bounds = array<i64: 128, 128>}, {pipeline_mode = #tpu.pipeline_mode<synchronous>, transform_indices = @transform_4, window_bounds = array<i64: 1, 128>}, {pipeline_mode = #tpu.pipeline_mode<synchronous>, transform_indices = @transform_5, window_bounds = array<i64: 128, 256>}, {pipeline_mode = #tpu.pipeline_mode<synchronous>, transform_indices = @transform_6, window_bounds = array<i64: 1, 256>}, {pipeline_mode = #tpu.pipeline_mode<synchronous>, transform_indices = @transform_7, window_bounds = array<i64: 256, 128>}, {pipeline_mode = #tpu.pipeline_mode<synchronous>, transform_indices = @transform_8, window_bounds = array<i64: 1, 128>}, {transform_indices = @transform_9, window_bounds = array<i64: 8, 128>}]} {
    %c0 = arith.constant 0 : index
    %c0_0 = arith.constant 0 : index
    %0 = vector.load %arg1[%c0, %c0_0] : memref<8x32xbf16, #tpu.memory_space<vmem>>, vector<8x32xbf16>
    %c0_1 = arith.constant 0 : index
    %c0_2 = arith.constant 0 : index
    %1 = vector.load %arg2[%c0_1, %c0_2] : memref<32x128xbf16, #tpu.memory_space<vmem>>, vector<32x128xbf16>
    %cst = arith.constant dense<0.000000e+00> : vector<8x128xf32>
    %2 = tpu.matmul %0, %1, %cst {dimension_numbers = #tpu.dot_dimension_numbers<[1], [0], [0], [1], [0, 0, 1, 1], [], []>} : vector<8x32xbf16>, vector<32x128xbf16>, vector<8x128xf32> -> vector<8x128xf32>
    %c0_3 = arith.constant 0 : index
    %c0_4 = arith.constant 0 : index
    %3 = vector.load %arg3[%c0_3, %c0_4] : memref<1x128xf32, #tpu.memory_space<vmem>>, vector<1x128xf32>
    %4 = vector.broadcast %3 : vector<1x128xf32> to vector<8x128xf32>
    %5 = arith.addf %2, %4 : vector<8x128xf32>
    %cst_5 = arith.constant 0.000000e+00 : f32
    %6 = vector.broadcast %cst_5 : f32 to vector<8x128xf32>
    %7 = arith.maximumf %5, %6 : vector<8x128xf32>
    %8 = arith.truncf %7 : vector<8x128xf32> to vector<8x128xbf16>
    %c0_6 = arith.constant 0 : index
    %c0_7 = arith.constant 0 : index
    %9 = vector.load %arg4[%c0_6, %c0_7] : memref<128x128xbf16, #tpu.memory_space<vmem>>, vector<128x128xbf16>
    %cst_8 = arith.constant dense<0.000000e+00> : vector<8x128xf32>
    %10 = tpu.matmul %8, %9, %cst_8 {dimension_numbers = #tpu.dot_dimension_numbers<[1], [0], [0], [1], [0, 0, 1, 1], [], []>} : vector<8x128xbf16>, vector<128x128xbf16>, vector<8x128xf32> -> vector<8x128xf32>
    %c0_9 = arith.constant 0 : index
    %c0_10 = arith.constant 0 : index
    %11 = vector.load %arg5[%c0_9, %c0_10] : memref<1x128xf32, #tpu.memory_space<vmem>>, vector<1x128xf32>
    %12 = vector.broadcast %11 : vector<1x128xf32> to vector<8x128xf32>
    %13 = arith.addf %10, %12 : vector<8x128xf32>
    %cst_11 = arith.constant 0.000000e+00 : f32
    %14 = vector.broadcast %cst_11 : f32 to vector<8x128xf32>
    %15 = arith.maximumf %13, %14 : vector<8x128xf32>
    %16 = arith.truncf %15 : vector<8x128xf32> to vector<8x128xbf16>
    %c0_12 = arith.constant 0 : index
    %c0_13 = arith.constant 0 : index
    %17 = vector.load %arg6[%c0_12, %c0_13] : memref<128x256xbf16, #tpu.memory_space<vmem>>, vector<128x256xbf16>
    %cst_14 = arith.constant dense<0.000000e+00> : vector<8x256xf32>
    %18 = tpu.matmul %16, %17, %cst_14 {dimension_numbers = #tpu.dot_dimension_numbers<[1], [0], [0], [1], [0, 0, 1, 1], [], []>} : vector<8x128xbf16>, vector<128x256xbf16>, vector<8x256xf32> -> vector<8x256xf32>
    %c0_15 = arith.constant 0 : index
    %c0_16 = arith.constant 0 : index
    %19 = vector.load %arg7[%c0_15, %c0_16] : memref<1x256xf32, #tpu.memory_space<vmem>>, vector<1x256xf32>
    %20 = vector.broadcast %19 : vector<1x256xf32> to vector<8x256xf32>
    %21 = arith.addf %18, %20 : vector<8x256xf32>
    %cst_17 = arith.constant 0.000000e+00 : f32
    %22 = vector.broadcast %cst_17 : f32 to vector<8x256xf32>
    %23 = arith.maximumf %21, %22 : vector<8x256xf32>
    %24 = arith.truncf %23 : vector<8x256xf32> to vector<8x256xbf16>
    %c0_18 = arith.constant 0 : index
    %c0_19 = arith.constant 0 : index
    %25 = vector.load %arg8[%c0_18, %c0_19] : memref<256x128xbf16, #tpu.memory_space<vmem>>, vector<256x128xbf16>
    %cst_20 = arith.constant dense<0.000000e+00> : vector<8x128xf32>
    %26 = tpu.matmul %24, %25, %cst_20 {dimension_numbers = #tpu.dot_dimension_numbers<[1], [0], [0], [1], [0, 0, 1, 1], [], []>} : vector<8x256xbf16>, vector<256x128xbf16>, vector<8x128xf32> -> vector<8x128xf32>
    %c0_21 = arith.constant 0 : index
    %c0_22 = arith.constant 0 : index
    %27 = vector.load %arg9[%c0_21, %c0_22] : memref<1x128xf32, #tpu.memory_space<vmem>>, vector<1x128xf32>
    %28 = vector.broadcast %27 : vector<1x128xf32> to vector<8x128xf32>
    %29 = arith.addf %26, %28 : vector<8x128xf32>
    %c0_23 = arith.constant 0 : index
    %c0_24 = arith.constant 0 : index
    %30 = vector.load %arg10[%c0_23, %c0_24] : memref<8x128xf32, #tpu.memory_space<vmem>>, vector<8x128xf32>
    tpu.vector_store %arg10[%c0_23, %c0_24], %29 {strides = array<i32>} : memref<8x128xf32, #tpu.memory_space<vmem>>, vector<8x128xf32>,
    return
  }
  func.func @transform_0(%arg0: i32) -> (i32, i32) {
    %c0_i32 = arith.constant 0 : i32
    %c0_i32_0 = arith.constant 0 : i32
    return %arg0, %c0_i32 : i32, i32
  }
  func.func @transform_1(%arg0: i32) -> (i32, i32) {
    %c0_i32 = arith.constant 0 : i32
    %c0_i32_0 = arith.constant 0 : i32
    %c0_i32_1 = arith.constant 0 : i32
    return %c0_i32, %c0_i32_0 : i32, i32
  }
  func.func @transform_2(%arg0: i32) -> (i32, i32) {
    %c0_i32 = arith.constant 0 : i32
    %c0_i32_0 = arith.constant 0 : i32
    %c0_i32_1 = arith.constant 0 : i32
    return %c0_i32, %c0_i32_0 : i32, i32
  }
  func.func @transform_3(%arg0: i32) -> (i32, i32) {
    %c0_i32 = arith.constant 0 : i32
    %c0_i32_0 = arith.constant 0 : i32
    %c0_i32_1 = arith.constant 0 : i32
    return %c0_i32, %c0_i32_0 : i32, i32
  }
  func.func @transform_4(%arg0: i32) -> (i32, i32) {
    %c0_i32 = arith.constant 0 : i32
    %c0_i32_0 = arith.constant 0 : i32
    %c0_i32_1 = arith.constant 0 : i32
    return %c0_i32, %c0_i32_0 : i32, i32
  }
  func.func @transform_5(%arg0: i32) -> (i32, i32) {
    %c0_i32 = arith.constant 0 : i32
    %c0_i32_0 = arith.constant 0 : i32
    %c0_i32_1 = arith.constant 0 : i32
    return %c0_i32, %c0_i32_0 : i32, i32
  }
  func.func @transform_6(%arg0: i32) -> (i32, i32) {
    %c0_i32 = arith.constant 0 : i32
    %c0_i32_0 = arith.constant 0 : i32
    %c0_i32_1 = arith.constant 0 : i32
    return %c0_i32, %c0_i32_0 : i32, i32
  }
  func.func @transform_7(%arg0: i32) -> (i32, i32) {
    %c0_i32 = arith.constant 0 : i32
    %c0_i32_0 = arith.constant 0 : i32
    %c0_i32_1 = arith.constant 0 : i32
    return %c0_i32, %c0_i32_0 : i32, i32
  }
  func.func @transform_8(%arg0: i32) -> (i32, i32) {
    %c0_i32 = arith.constant 0 : i32
    %c0_i32_0 = arith.constant 0 : i32
    %c0_i32_1 = arith.constant 0 : i32
    return %c0_i32, %c0_i32_0 : i32, i32
  }
  func.func @transform_9(%arg0: i32) -> (i32, i32) {
    %c0_i32 = arith.constant 0 : i32
    %c0_i32_0 = arith.constant 0 : i32
    return %arg0, %c0_i32 : i32, i32
  }
}

</mosaic_0001>

<bundles_post_ra>
// kernel: dueling_forward.1
= control target key start
LH: loop header
LB: loop body
LE: loop exit
PB: predicated region body
PF: predicated region fallthrough
CT: control target
= control target key end

     0   :  { %14 = vsyncpa [#allocation3], 0  ;;  %s950_s0 = inlined_call_operand.vmem [shape: bf16[8,32], index: 0, kind: input, shape index: {}]   ;;  %s951_s1 = inlined_call_operand.vmem [shape: bf16[32,128], index: 1, kind: input, shape index: {}]   ;;  %s952_s2 = inlined_call_operand.vmem [shape: f32[1,128], index: 2, kind: input, shape index: {}]   ;;  %s953_s3 = inlined_call_operand.hbm [shape: bf16[128,128], index: 3, kind: input, shape index: {}]   ;;  %s954_s4 = inlined_call_operand.vmem [shape: f32[1,128], index: 4, kind: input, shape index: {}]   ;;  %s955_s5 = inlined_call_operand.hbm [shape: bf16[128,256], index: 5, kind: input, shape index: {}]   ;;  %s956_s6 = inlined_call_operand.vmem [shape: f32[1,256], index: 6, kind: input, shape index: {}]   ;;  %s957_s7 = inlined_call_operand.hbm [shape: bf16[256,128], index: 7, kind: input, shape index: {}]   ;;  %s958_s8 = inlined_call_operand.vmem [shape: f32[1,128], index: 8, kind: input, shape index: {}]   ;;  %s959_s9 = inlined_call_operand.vmem [shape: f32[8,128], index: 9, kind: output, shape index: {}]  }
   0x1   :  { %15 = vsyncpa [#allocation5], 0  ;;  %s830_s30 = smov [#allocation4]   ;;  %s760_s13 = scalar_lea.hbm %s955_s5, 2048 }
   0x2   :  { %s41_s10 = sshll.u32 %s830_s30, 4  ;;  %p761_p0 = scmp.ne.s32.totalorder %s955_s5, %s760_s13  ;;  %s42_s10 = int_to_ptr.vmem [resolvable:$true] %s41_s10 }
   0x3   :  { %p764_p1 = scmp.lt.u32.totalorder %s760_s13, %s955_s5 }
   0x5   :  { %p766_p2 = pnand %p764_p1, %p761_p0 }
   0x7   :  { %769 = shalt.err (!%p766_p2)
}
   0x8   :  { %s770_s18 = scalar_lea.vmem %s42_s10, 2048  ;;  %p775_p4 = scmp.lt.s32.totalorder %s42_s10, %s42_s10 }
   0x9   :  { %p771_p3 = scmp.ne.s32.totalorder %s42_s10, %s770_s18  ;;  %p776_p5 = scmp.lt.s32.totalorder %s770_s18, %s770_s18 }
   0xb   :  { %p777_p6 = por %p776_p5, %p775_p4 }
   0xd   :  { %p778_p7 = pnand %p777_p6, %p771_p3 }
   0xf   :  { %781 = shalt.err (!%p778_p7)
}
  0x10   :  { %s831_s19 = smov 128   ;;  %s832_s20 = smov 8  }
  0x11   :  { %47 = dma.hbm_to_vmem [thread:$0]  %s955_s5, 2048, %s42_s10, [#allocation5], %s831_s19, %s831_s19, %s832_s20  }
  0x12   :  { %s833_s23 = smov [#allocation2]   ;;  %s782_s27 = scalar_lea.hbm %s953_s3, 1024 }
  0x13   :  { %s27_s24 = sshll.u32 %s833_s23, 4  ;;  %p783_p8 = scmp.ne.s32.totalorder %s953_s3, %s782_s27  ;;  %s28_s24 = int_to_ptr.vmem [resolvable:$true] %s27_s24 }
  0x14   :  { %p786_p9 = scmp.lt.u32.totalorder %s782_s27, %s953_s3 }
  0x16   :  { %p788_p10 = pnand %p786_p9, %p783_p8 }
  0x18   :  { %791 = shalt.err (!%p788_p10)
}
  0x19   :  { %s792_s12 = scalar_lea.vmem %s28_s24, 1024  ;;  %p797_p12 = scmp.lt.s32.totalorder %s28_s24, %s28_s24 }
  0x1a   :  { %p793_p11 = scmp.ne.s32.totalorder %s28_s24, %s792_s12  ;;  %p798_p13 = scmp.lt.s32.totalorder %s792_s12, %s792_s12 }
  0x1c   :  { %p799_p0 = por %p798_p13, %p797_p12 }
  0x1e   :  { %p800_p1 = pnand %p799_p0, %p793_p11 }
  0x20   :  { %803 = shalt.err (!%p800_p1)
}
  0x21   :  { %s834_s5 = smov 64   ;;  %s835_s10 = smov 4  }
  0x22   :  { %33 = dma.hbm_to_vmem [thread:$0]  %s953_s3, 1024, %s28_s24, [#allocation3], %s834_s5, %s834_s5, %s835_s10  }
  0x23   :  { %s836_s15 = smov [#allocation6]   ;;  %s804_s19 = scalar_lea.hbm %s957_s7, 2048 }
  0x24   :  { %s55_s16 = sshll.u32 %s836_s15, 4  ;;  %p805_p2 = scmp.ne.s32.totalorder %s957_s7, %s804_s19  ;;  %s56_s16 = int_to_ptr.vmem [resolvable:$true] %s55_s16 }
  0x25   :  { %p808_p3 = scmp.lt.u32.totalorder %s804_s19, %s957_s7 }
  0x27   :  { %p810_p4 = pnand %p808_p3, %p805_p2 }
  0x29   :  { %813 = shalt.err (!%p810_p4)
}
  0x2a   :  { %s814_s25 = scalar_lea.vmem %s56_s16, 2048  ;;  %p819_p6 = scmp.lt.s32.totalorder %s56_s16, %s56_s16 }
  0x2b   :  { %p815_p5 = scmp.ne.s32.totalorder %s56_s16, %s814_s25  ;;  %p820_p7 = scmp.lt.s32.totalorder %s814_s25, %s814_s25 }
  0x2d   :  { %p821_p8 = por %p820_p7, %p819_p6 }
  0x2f   :  { %p822_p9 = pnand %p821_p8, %p815_p5 }
  0x31   :  { %825 = shalt.err (!%p822_p9)
}
  0x32   :  { %61 = dma.hbm_to_vmem [thread:$0]  %s957_s7, 2048, %s56_s16, [#allocation5], %s834_s5, %s834_s5, %s835_s10  }
  0x33   :  { %826 = dma.done.wait [#allocation3], 1024  }
  0x34   :  { %827 = vsyncadd [#allocation3], 4294966272 }
  0x35   :  { %828 = dma.done.wait [#allocation5], 4096  }
  0x36   :  { %829 = vsyncadd [#allocation5], 4294963200  ;;  %v837_v0 = vmov 0.0   ;;  %vm838_vm0 = vmmov 0   ;;  %v710_v1 = vld [vmem:[%s951_s1] sm:$0xff]   ;;  %v711_v2 = vld [vmem:[%s951_s1 + $0x8] sm:$0xff]   ;;  %v275_v61 = vlaneseq }
  0x37   :  { %672 = vmatprep.subr.bf16.mxu0 %v837_v0  ;;  %676 = vmatprep.mubr.msk.bf16.mxu0 %vm838_vm0, %v837_v0  ;;  %v712_v3 = vld [vmem:[#allocation2] sm:$0xff]   ;;  %vm98_vm1 = vcmask 261120   ;;  %v713_v4 = vld [vmem:[#allocation2 + $0x8] sm:$0xff]   ;;  %v714_v6 = vld [vmem:[#allocation2 + $0x10] sm:$0xff]   ;;  %v839_v36 = vmov 0  }
  0x38   :  { %680 = vmatprep.subr.bf16.mxu1 %v837_v0  ;;  %696 = vmatprep.mubr.msk.bf16.mxu1 %vm838_vm0, %v837_v0  ;;  %v74_v5 = vld [vmem:[%s950_s0] sm:$0xf]  ;;  %v715_v7 = vld [vmem:[#allocation2 + $0x18] sm:$0xff]   ;;  %v716_v8 = vld [vmem:[#allocation2 + $0x20] sm:$0xff]   ;;  %v276_v62 = vshrl.u32 %v275_v61, 7 }
  0x39   :  { %673 = vmatpush3.bf16.msra.mxu0 %v710_v1  ;;  %681 = vmatpush3.bf16.msra.mxu1 %v712_v3  ;;  %v717_v9 = vld [vmem:[#allocation2 + $0x28] sm:$0xff]   ;;  %v718_v10 = vld [vmem:[#allocation2 + $0x30] sm:$0xff]   ;;  %v719_v11 = vld [vmem:[#allocation2 + $0x38] sm:$0xff]  }
  0x3a   :  { %674 = vmatprep.subr.bf16.mxu0 %v837_v0  ;;  %682 = vmatprep.subr.bf16.mxu1 %v837_v0  ;;  %v720_v12 = vld [vmem:[#allocation4] ss:$8 sps:$4 sm:$0xff]   ;;  %v722_v13 = vld [vmem:[#allocation4 + $0x4] ss:$8 sps:$4 sm:$0xff]   ;;  %v725_v14 = vld [vmem:[#allocation4 + $0x14] ss:$8 sps:$4 sm:$0xff]  }
  0x3b   :  { %v723_v15 = vld [vmem:[#allocation4 + $0x10] ss:$8 sps:$4 sm:$0xff]   ;;  %v728_v16 = vld [vmem:[#allocation4 + $0x24] ss:$8 sps:$4 sm:$0xff]   ;;  %v726_v17 = vld [vmem:[#allocation4 + $0x20] ss:$8 sps:$4 sm:$0xff]  }
  0x3c   :  { %v731_v18 = vld [vmem:[#allocation4 + $0x34] ss:$8 sps:$4 sm:$0xff]   ;;  %v729_v19 = vld [vmem:[#allocation4 + $0x30] ss:$8 sps:$4 sm:$0xff]   ;;  %v734_v20 = vld [vmem:[#allocation4 + $0x44] ss:$8 sps:$4 sm:$0xff]  }
  0x3d   :  { %675 = vmatpush3.bf16.msra.mxu0 %v711_v2  ;;  %683 = vmatpush3.bf16.msra.mxu1 %v713_v4  ;;  %v732_v21 = vld [vmem:[#allocation4 + $0x40] ss:$8 sps:$4 sm:$0xff]   ;;  %v737_v22 = vld [vmem:[#allocation4 + $0x54] ss:$8 sps:$4 sm:$0xff]   ;;  %v735_v23 = vld [vmem:[#allocation4 + $0x50] ss:$8 sps:$4 sm:$0xff]  }
  0x3e   :  { %684 = vmatprep.subr.bf16.mxu1 %v837_v0  ;;  %365 = vmatprep.subr.bf16.mxu0 %v722_v13  ;;  %v740_v24 = vld [vmem:[#allocation4 + $0x64] ss:$8 sps:$4 sm:$0xff]   ;;  %v738_v25 = vld [vmem:[#allocation4 + $0x60] ss:$8 sps:$4 sm:$0xff]   ;;  %v743_v34 = vld [vmem:[#allocation4 + $0x74] ss:$8 sps:$4 sm:$0xff]  }
  0x3f   :  { %v592_v26 = vld [vmem:[%s952_s2] ss:$0 sm:$0xff]  ;;  %v741_v35 = vld [vmem:[#allocation4 + $0x70] ss:$8 sps:$4 sm:$0xff]   ;;  %v744_v37 = vld [vmem:[#allocation6 + $0x40] sm:$0xff]   ;;  %v277_v63 = vsub.s32 0, %v276_v62 }
  0x40   :  { %677 = vmatmul.mubr.msk.bf16.vlgmr.msra.gmra.mrb[0].mxu0 %vm98_vm1, %v74_v5  ;;  %v745_v38 = vld [vmem:[#allocation6] sm:$0xff]   ;;  %v746_v39 = vld [vmem:[#allocation6 + $0x48] sm:$0xff]   ;;  %v748_v41 = vld [vmem:[#allocation6 + $0x50] sm:$0xff]   ;;  %v281_v1 = vsub.s32 1, %v276_v62 }
  0x41   :  { %685 = vmatpush3.bf16.msra.mxu1 %v714_v6  ;;  %366 = vmatpush1.bf16.msra.mxu0 %v720_v12  ;;  %v747_v40 = vld [vmem:[#allocation6 + $0x8] sm:$0xff]   ;;  %v749_v42 = vld [vmem:[#allocation6 + $0x10] sm:$0xff]   ;;  %v750_v43 = vld [vmem:[#allocation6 + $0x58] sm:$0xff]  }
  0x42   :  { %686 = vmatprep.subr.bf16.mxu1 %v837_v0  ;;  %367 = vmatprep.subr.bf16.mxu0 %v725_v14  ;;  %v751_v44 = vld [vmem:[#allocation6 + $0x18] sm:$0xff]   ;;  %v752_v45 = vld [vmem:[#allocation6 + $0x60] sm:$0xff]   ;;  %v754_v47 = vld [vmem:[#allocation6 + $0x68] sm:$0xff]  }
  0x43   :  { %397 = vmatprep.mubr.bf16.mxu0 %v839_v36  ;;  %v753_v46 = vld [vmem:[#allocation6 + $0x20] sm:$0xff]   ;;  %v755_v48 = vld [vmem:[#allocation6 + $0x28] sm:$0xff]   ;;  %v756_v57 = vld [vmem:[#allocation6 + $0x70] sm:$0xff]  }
  0x44   :  { %v596_v49 = vld [vmem:[%s954_s4] ss:$0 sm:$0xff]  ;;  %v757_v58 = vld [vmem:[#allocation6 + $0x30] sm:$0xff]   ;;  %v758_v59 = vld [vmem:[#allocation6 + $0x78] sm:$0xff]  }
  0x45   :  { %687 = vmatpush3.bf16.msra.mxu1 %v715_v7  ;;  %368 = vmatpush1.bf16.msra.mxu0 %v723_v15  ;;  %v759_v60 = vld [vmem:[#allocation6 + $0x38] sm:$0xff]   ;;  %v621_v15 = vld [vmem:[%s958_s8] ss:$0 sm:$0xff] }
  0x46   :  { %688 = vmatprep.subr.bf16.mxu1 %v837_v0  ;;  %369 = vmatprep.subr.bf16.mxu0 %v728_v16 }
  0x49   :  { %689 = vmatpush3.bf16.msra.mxu1 %v716_v8  ;;  %370 = vmatpush1.bf16.msra.mxu0 %v726_v17 }
  0x4a   :  { %690 = vmatprep.subr.bf16.mxu1 %v837_v0  ;;  %371 = vmatprep.subr.bf16.mxu0 %v731_v18 }
  0x4d   :  { %691 = vmatpush3.bf16.msra.mxu1 %v717_v9  ;;  %372 = vmatpush1.bf16.msra.mxu0 %v729_v19 }
  0x4e   :  { %692 = vmatprep.subr.bf16.mxu1 %v837_v0  ;;  %373 = vmatprep.subr.bf16.mxu0 %v734_v20 }
  0x51   :  { %693 = vmatpush3.bf16.msra.mxu1 %v718_v10  ;;  %374 = vmatpush1.bf16.msra.mxu0 %v732_v21 }
  0x52   :  { %694 = vmatprep.subr.bf16.mxu1 %v837_v0  ;;  %375 = vmatprep.subr.bf16.mxu0 %v737_v22  ;;  %v273_v0 = vld [vmem:[%s956_s6] sm:$0x3] }
  0x53   :  { %v278_v2 = vrot.slane %v273_v0, %v277_v63  ;;  %v282_v3 = vrot.slane %v273_v0, %v281_v1 }
  0x55   :  { %695 = vmatpush3.bf16.msra.mxu1 %v719_v11  ;;  %376 = vmatpush1.bf16.msra.mxu0 %v735_v23 }
  0x56   :  { %377 = vmatprep.subr.bf16.mxu0 %v740_v24  ;;  %650 = vmatprep.subr.bf16.mxu1 %v744_v37 }
  0x59   :  { %378 = vmatpush1.bf16.msra.mxu0 %v738_v25 }
  0x5a   :  { %379 = vmatprep.subr.bf16.mxu0 %v743_v34 }
  0x5d   :  { %380 = vmatpush1.bf16.msra.mxu0 %v741_v35 }
 0x113   :  { %v136_v27 = vpop.f32.mrb[0].mxu0 }
 0x114   :  { %v137_v28 = vadd.f32 %v592_v26, %v136_v27  ;;  %v678_v29 = vpop.f32.mrb[1].mxu0 }
 0x115   :  { %v139_v30 = vpop.f32.mrb[2].mxu0 }
 0x116   :  { %v142_v31 = vmax.f32 %v137_v28, 0.0  ;;  %v679_v32 = vpop.f32.mrb[3].mxu0 }
 0x118   :  { %v143_v33 = vpack.c.bf16 %v142_v31, %v142_v31 }
 0x11a   :  { %697 = vmatmul.mubr.bf16.vlgmr.msra.gmra.mrb[0].mxu1 %v143_v33 }
 0x11b   :  { %651 = vmatpush3.bf16.msra.mxu1 %v745_v38 }
 0x11c   :  { %652 = vmatprep.subr.bf16.mxu1 %v746_v39 }
 0x11f   :  { %653 = vmatpush3.bf16.msra.mxu1 %v747_v40 }
 0x120   :  { %654 = vmatprep.subr.bf16.mxu1 %v748_v41 }
 0x123   :  { %655 = vmatpush3.bf16.msra.mxu1 %v749_v42 }
 0x124   :  { %656 = vmatprep.subr.bf16.mxu1 %v750_v43 }
 0x127   :  { %657 = vmatpush3.bf16.msra.mxu1 %v751_v44 }
 0x128   :  { %658 = vmatprep.subr.bf16.mxu1 %v752_v45 }
 0x12b   :  { %659 = vmatpush3.bf16.msra.mxu1 %v753_v46 }
 0x12c   :  { %660 = vmatprep.subr.bf16.mxu1 %v754_v47 }
 0x12f   :  { %661 = vmatpush3.bf16.msra.mxu1 %v755_v48 }
 0x130   :  { %662 = vmatprep.subr.bf16.mxu1 %v756_v57 }
 0x133   :  { %663 = vmatpush3.bf16.msra.mxu1 %v757_v58 }
 0x134   :  { %664 = vmatprep.subr.bf16.mxu1 %v758_v59 }
 0x137   :  { %665 = vmatpush3.bf16.msra.mxu1 %v759_v60 }
 0x1ed   :  { %v249_v50 = vpop.f32.mrb[0].mxu1 }
 0x1ee   :  { %v250_v51 = vadd.f32 %v596_v49, %v249_v50  ;;  %v698_v52 = vpop.f32.mrb[1].mxu1 }
 0x1ef   :  { %v252_v53 = vpop.f32.mrb[2].mxu1 }
 0x1f0   :  { %v255_v54 = vmax.f32 %v250_v51, 0.0  ;;  %v699_v55 = vpop.f32.mrb[3].mxu1 }
 0x1f2   :  { %v256_v56 = vpack.c.bf16 %v255_v54, %v255_v54 }
 0x1f4   :  { %398 = vmatmul.mubr.bf16.vlgmr.msra.gmra.mrb[4].mxu0 %v256_v56 }
 0x2c7   :  { %v399_v4 = vpop.f32.mrb[4].mxu0 }
 0x2c8   :  { %v400_v5 = vadd.f32 %v399_v4, %v278_v2  ;;  %v401_v6 = vpop.f32.mrb[5].mxu0 }
 0x2c9   :  { %v402_v7 = vadd.f32 %v401_v6, %v282_v3  ;;  %v403_v8 = vpop.f32.mrb[6].mxu0 }
 0x2ca   :  { %v406_v9 = vmax.f32 %v400_v5, 0.0  ;;  %v404_v10 = vpop.f32.mrb[7].mxu0 }
 0x2cb   :  { %v407_v11 = vmax.f32 %v402_v7, 0.0 }
 0x2cc   :  { %v408_v13 = vpack.c.bf16 %v406_v9, %v406_v9 }
 0x2cd   :  { %v409_v12 = vpack.c.bf16 %v407_v11, %v407_v11 }
 0x2cf   :  { %577 = vmatprep.mubr.bf16.mxu1 %v409_v12 }
 0x2d0   :  { %578 = vmatmul.mubr.bf16.vlgmr.msra.gmra.mrb[4].mxu1 %v408_v13 }
 0x3a3   :  { %v666_v14 = vpop.f32.mrb[4].mxu1 }
 0x3a4   :  { %v667_v16 = vpop.f32.mrb[5].mxu1 }
 0x3a5   :  { %v668_v17 = vadd.f32 %v667_v16, %v666_v14  ;;  %v669_v18 = vpop.f32.mrb[6].mxu1 }
 0x3a6   :  { %v670_v19 = vpop.f32.mrb[7].mxu1 }
 0x3a7   :  { %v580_v20 = vadd.f32 %v668_v17, %v621_v15 }
 0x3a9   :  { %585 = vst [vmem:[%s959_s9] sm:$0xff] %v580_v20 }
 0x3aa   :  { %590 = vsyncpa [#allocation3], 1 }
 0x3ab   :  { %591 = vsyncpa [#allocation5], 1 }

</bundles_post_ra>
